<compile_context>
chip_gen: v7x
topology: tpu7x:2x2x1
jax: 0.10.0
libtpu: 0.0.40
codegen_flags: <defaults>
</compile_context>

<pallas_src>
import functools

import jax
import jax.numpy as jnp
from jax.experimental import pallas as pl
from jax.experimental.pallas import tpu as pltpu

DIMS = [784, 256, 128, 64, 32, 10]   # fc1..fc5


def _round_up(x, m):
    return (x + m - 1) // m * m


def mlp_kernel(x_ref, w1, b1, w2, b2, w3, b3, w4, b4, w5, b5, o_ref):
    """Fused 5-layer MLP on one (tm, 784) batch tile.

    All weights live in VMEM for the whole kernel; only the batch dimension is
    tiled by the grid.  The input tile is cast to bf16 here (not in the wrapper)
    so only the raw bytes are streamed from HBM.  Matmuls are bf16 x bf16 -> f32
    on the MXU; bias add + ReLU stay on the f32 accumulator.
    """
    h = x_ref[...].astype(jnp.bfloat16)                 # in-kernel cast, (tm, 784) bf16
    layers = ((w1, b1), (w2, b2), (w3, b3), (w4, b4), (w5, b5))
    n = len(layers)
    for idx, (w_ref, b_ref) in enumerate(layers):
        acc = jnp.dot(h, w_ref[...], preferred_element_type=jnp.float32)
        acc = acc + b_ref[...]                          # f32 bias add (broadcast over rows)
        if idx < n - 1:
            h = jnp.maximum(acc, 0.0).astype(jnp.bfloat16)   # ReLU in f32, bf16 feeds next MXU pass
        else:
            o_ref[...] = acc                            # (tm, 10) f32 logits


def init_params(key):
    """PyTorch-default-style Linear init: U(-1/sqrt(fan_in), 1/sqrt(fan_in))."""
    params = []
    for i in range(len(DIMS) - 1):
        fan_in, fan_out = DIMS[i], DIMS[i + 1]
        key, kw, kb = jax.random.split(key, 3)
        bound = 1.0 / jnp.sqrt(fan_in)
        w = jax.random.uniform(kw, (fan_in, fan_out), jnp.float32, -bound, bound)
        b = jax.random.uniform(kb, (1, fan_out), jnp.float32, -bound, bound)
        params.append((w, b))
    return params


def _prepare_params(params):
    """bf16 weights (MXU operands), f32 biases (accumulator adds). No padding anywhere."""
    return [(w.astype(jnp.bfloat16), b.astype(jnp.float32).reshape(1, -1))
            for w, b in params]


def _choose_tile(batch, tm):
    """Pick the batch-tile size and number of grid steps.

    - tile rows are a multiple of 16 (bf16 sublane pairs)
    - for B >= 512 the tile is capped at ceil(B/2) so the 'parallel' axis has at
      least 2 steps (lets v7x shard across its 2 TensorCores; ~free elsewhere)
    - small batches use a single tile whose row count equals the full batch dim
      (legal BlockSpec even when B is not a multiple of 8), so no padding is needed
    - otherwise grid = cdiv(B, tm); the last tile is a clipped boundary block
    """
    tm = max(16, _round_up(tm, 16))
    if batch >= 512:
        tm = min(tm, _round_up(pl.cdiv(batch, 2), 16))
    if batch <= tm:
        return batch, 1
    return tm, pl.cdiv(batch, tm)


@functools.partial(jax.jit, static_argnames=("tm",))
def shallow_network(x, params, tm=1024):
    """x: (B, H, W) with H*W == 784. Returns logits (B, 10) in f32."""
    B = x.shape[0]
    x2 = x.reshape(B, x.shape[1] * x.shape[2])   # free reshape; dtype left as-is (cast in-kernel)
    assert x2.shape[1] == DIMS[0]

    tm_eff, steps = _choose_tile(B, tm)
    prepped = _prepare_params(params)

    # Input: raw (B, 784) streamed per batch tile (784 == full last dim -> legal block).
    in_specs = [pl.BlockSpec((tm_eff, DIMS[0]), lambda i: (i, 0))]
    flat_args = [x2]
    for w, b in prepped:
        # Weights / biases: full-array, grid-invariant blocks (constant index_map,
        # so Pallas does not re-DMA them per batch tile).
        in_specs.append(pl.BlockSpec(w.shape, lambda i: (0, 0)))
        in_specs.append(pl.BlockSpec(b.shape, lambda i: (0, 0)))
        flat_args += [w, b]

    out = pl.pallas_call(
        mlp_kernel,
        out_shape=jax.ShapeDtypeStruct((B, DIMS[-1]), jnp.float32),
        grid=(steps,),
        in_specs=in_specs,
        # Narrow (tm, 10) output block: 10 == full last dim, contiguous in HBM,
        # 12.8x fewer write bytes than the old 128-wide padded slab.
        out_specs=pl.BlockSpec((tm_eff, DIMS[-1]), lambda i: (i, 0)),
        compiler_params=pltpu.CompilerParams(
            dimension_semantics=("parallel",),        # batch axis shards across TCs (v7x)
            vmem_limit_bytes=32 * 1024 * 1024,        # clears v5e's 16 MiB scoped default at tm=1024
        ),
    )(*flat_args)
    return out


def reference_forward(x, params):
    """Pure-JAX reference using the same bf16-operand / f32-accumulate path."""
    h = x.reshape(x.shape[0], -1).astype(jnp.bfloat16)
    for i, (w, b) in enumerate(params):
        acc = jnp.dot(h, w.astype(jnp.bfloat16),
                      preferred_element_type=jnp.float32) + b.astype(jnp.float32)
        if i < len(params) - 1:
            h = jnp.maximum(acc, 0.0).astype(jnp.bfloat16)
        else:
            h = acc
    return h


if __name__ == "__main__":
    key = jax.random.PRNGKey(0)
    key, kx = jax.random.split(key)
    params = init_params(key)

    # Small batch consistent with the module's (B, 28, 28) -> (B, 784) flatten.
    x = jax.random.normal(kx, (8, 28, 28), dtype=jnp.float32)
    out = jax.block_until_ready(shallow_network(x, params))
    ref = reference_forward(x, params)
    assert out.shape == (8, 10)
    assert jnp.allclose(out, ref, atol=1e-3, rtol=1e-3), float(
        jnp.max(jnp.abs(out - ref)))

    # Non-divisible batch + multi-step grid with a clipped boundary tile:
    # B=20, tm=16 -> grid=(2,), last tile has only 4 valid rows.
    key, kx2 = jax.random.split(key)
    x2 = jax.random.normal(kx2, (20, 28, 28), dtype=jnp.float32)
    out2 = jax.block_until_ready(shallow_network(x2, params, tm=16))
    ref2 = reference_forward(x2, params)
    assert out2.shape == (20, 10)
    assert jnp.allclose(out2, ref2, atol=1e-3, rtol=1e-3), float(
        jnp.max(jnp.abs(out2 - ref2)))

    print("KERNEL_OK")
</pallas_src>

<mosaic_0001>
module attributes {stable_mosaic.version = 11 : i64} {
  func.func @mlp_kernel(%arg0: i32, %arg1: memref<8x784xf32, #tpu.memory_space<vmem>>, %arg2: memref<784x256xbf16, #tpu.memory_space<vmem>>, %arg3: memref<1x256xf32, #tpu.memory_space<vmem>>, %arg4: memref<256x128xbf16, #tpu.memory_space<vmem>>, %arg5: memref<1x128xf32, #tpu.memory_space<vmem>>, %arg6: memref<128x64xbf16, #tpu.memory_space<vmem>>, %arg7: memref<1x64xf32, #tpu.memory_space<vmem>>, %arg8: memref<64x32xbf16, #tpu.memory_space<vmem>>, %arg9: memref<1x32xf32, #tpu.memory_space<vmem>>, %arg10: memref<32x10xbf16, #tpu.memory_space<vmem>>, %arg11: memref<1x10xf32, #tpu.memory_space<vmem>>, %arg12: memref<8x10xf32, #tpu.memory_space<vmem>>) attributes {dimension_semantics = [#tpu.dimension_semantics<parallel>], iteration_bounds = array<i64: 1>, scalar_prefetch = 0 : i64, scratch_operands = 0 : i64, tpu.core_type = #tpu.core_type<tc>, window_params = [{transform_indices = @transform_0, window_bounds = array<i64: 8, 784>}, {pipeline_mode = #tpu.pipeline_mode<synchronous>, transform_indices = @transform_1, window_bounds = array<i64: 784, 256>}, {pipeline_mode = #tpu.pipeline_mode<synchronous>, transform_indices = @transform_2, window_bounds = array<i64: 1, 256>}, {pipeline_mode = #tpu.pipeline_mode<synchronous>, transform_indices = @transform_3, window_bounds = array<i64: 256, 128>}, {pipeline_mode = #tpu.pipeline_mode<synchronous>, transform_indices = @transform_4, window_bounds = array<i64: 1, 128>}, {pipeline_mode = #tpu.pipeline_mode<synchronous>, transform_indices = @transform_5, window_bounds = array<i64: 128, 64>}, {pipeline_mode = #tpu.pipeline_mode<synchronous>, transform_indices = @transform_6, window_bounds = array<i64: 1, 64>}, {pipeline_mode = #tpu.pipeline_mode<synchronous>, transform_indices = @transform_7, window_bounds = array<i64: 64, 32>}, {pipeline_mode = #tpu.pipeline_mode<synchronous>, transform_indices = @transform_8, window_bounds = array<i64: 1, 32>}, {pipeline_mode = #tpu.pipeline_mode<synchronous>, transform_indices = @transform_9, window_bounds = array<i64: 32, 10>}, {pipeline_mode = #tpu.pipeline_mode<synchronous>, transform_indices = @transform_10, window_bounds = array<i64: 1, 10>}, {transform_indices = @transform_11, window_bounds = array<i64: 8, 10>}]} {
    %c0 = arith.constant 0 : index
    %c0_0 = arith.constant 0 : index
    %0 = vector.load %arg1[%c0, %c0_0] : memref<8x784xf32, #tpu.memory_space<vmem>>, vector<8x784xf32>
    %1 = arith.truncf %0 : vector<8x784xf32> to vector<8x784xbf16>
    %c0_1 = arith.constant 0 : index
    %c0_2 = arith.constant 0 : index
    %2 = vector.load %arg2[%c0_1, %c0_2] : memref<784x256xbf16, #tpu.memory_space<vmem>>, vector<784x256xbf16>
    %cst = arith.constant dense<0.000000e+00> : vector<8x256xf32>
    %3 = tpu.matmul %1, %2, %cst {dimension_numbers = #tpu.dot_dimension_numbers<[1], [0], [0], [1], [0, 0, 1, 1], [], []>} : vector<8x784xbf16>, vector<784x256xbf16>, vector<8x256xf32> -> vector<8x256xf32>
    %c0_3 = arith.constant 0 : index
    %c0_4 = arith.constant 0 : index
    %4 = vector.load %arg3[%c0_3, %c0_4] : memref<1x256xf32, #tpu.memory_space<vmem>>, vector<1x256xf32>
    %5 = vector.broadcast %4 : vector<1x256xf32> to vector<8x256xf32>
    %6 = arith.addf %3, %5 : vector<8x256xf32>
    %cst_5 = arith.constant 0.000000e+00 : f32
    %7 = vector.broadcast %cst_5 : f32 to vector<8x256xf32>
    %8 = arith.maximumf %6, %7 : vector<8x256xf32>
    %9 = arith.truncf %8 : vector<8x256xf32> to vector<8x256xbf16>
    %c0_6 = arith.constant 0 : index
    %c0_7 = arith.constant 0 : index
    %10 = vector.load %arg4[%c0_6, %c0_7] : memref<256x128xbf16, #tpu.memory_space<vmem>>, vector<256x128xbf16>
    %cst_8 = arith.constant dense<0.000000e+00> : vector<8x128xf32>
    %11 = tpu.matmul %9, %10, %cst_8 {dimension_numbers = #tpu.dot_dimension_numbers<[1], [0], [0], [1], [0, 0, 1, 1], [], []>} : vector<8x256xbf16>, vector<256x128xbf16>, vector<8x128xf32> -> vector<8x128xf32>
    %c0_9 = arith.constant 0 : index
    %c0_10 = arith.constant 0 : index
    %12 = vector.load %arg5[%c0_9, %c0_10] : memref<1x128xf32, #tpu.memory_space<vmem>>, vector<1x128xf32>
    %13 = vector.broadcast %12 : vector<1x128xf32> to vector<8x128xf32>
    %14 = arith.addf %11, %13 : vector<8x128xf32>
    %cst_11 = arith.constant 0.000000e+00 : f32
    %15 = vector.broadcast %cst_11 : f32 to vector<8x128xf32>
    %16 = arith.maximumf %14, %15 : vector<8x128xf32>
    %17 = arith.truncf %16 : vector<8x128xf32> to vector<8x128xbf16>
    %c0_12 = arith.constant 0 : index
    %c0_13 = arith.constant 0 : index
    %18 = vector.load %arg6[%c0_12, %c0_13] : memref<128x64xbf16, #tpu.memory_space<vmem>>, vector<128x64xbf16>
    %cst_14 = arith.constant dense<0.000000e+00> : vector<8x64xf32>
    %19 = tpu.matmul %17, %18, %cst_14 {dimension_numbers = #tpu.dot_dimension_numbers<[1], [0], [0], [1], [0, 0, 1, 1], [], []>} : vector<8x128xbf16>, vector<128x64xbf16>, vector<8x64xf32> -> vector<8x64xf32>
    %c0_15 = arith.constant 0 : index
    %c0_16 = arith.constant 0 : index
    %20 = vector.load %arg7[%c0_15, %c0_16] : memref<1x64xf32, #tpu.memory_space<vmem>>, vector<1x64xf32>
    %21 = vector.broadcast %20 : vector<1x64xf32> to vector<8x64xf32>
    %22 = arith.addf %19, %21 : vector<8x64xf32>
    %cst_17 = arith.constant 0.000000e+00 : f32
    %23 = vector.broadcast %cst_17 : f32 to vector<8x64xf32>
    %24 = arith.maximumf %22, %23 : vector<8x64xf32>
    %25 = arith.truncf %24 : vector<8x64xf32> to vector<8x64xbf16>
    %c0_18 = arith.constant 0 : index
    %c0_19 = arith.constant 0 : index
    %26 = vector.load %arg8[%c0_18, %c0_19] : memref<64x32xbf16, #tpu.memory_space<vmem>>, vector<64x32xbf16>
    %cst_20 = arith.constant dense<0.000000e+00> : vector<8x32xf32>
    %27 = tpu.matmul %25, %26, %cst_20 {dimension_numbers = #tpu.dot_dimension_numbers<[1], [0], [0], [1], [0, 0, 1, 1], [], []>} : vector<8x64xbf16>, vector<64x32xbf16>, vector<8x32xf32> -> vector<8x32xf32>
    %c0_21 = arith.constant 0 : index
    %c0_22 = arith.constant 0 : index
    %28 = vector.load %arg9[%c0_21, %c0_22] : memref<1x32xf32, #tpu.memory_space<vmem>>, vector<1x32xf32>
    %29 = vector.broadcast %28 : vector<1x32xf32> to vector<8x32xf32>
    %30 = arith.addf %27, %29 : vector<8x32xf32>
    %cst_23 = arith.constant 0.000000e+00 : f32
    %31 = vector.broadcast %cst_23 : f32 to vector<8x32xf32>
    %32 = arith.maximumf %30, %31 : vector<8x32xf32>
    %33 = arith.truncf %32 : vector<8x32xf32> to vector<8x32xbf16>
    %c0_24 = arith.constant 0 : index
    %c0_25 = arith.constant 0 : index
    %34 = vector.load %arg10[%c0_24, %c0_25] : memref<32x10xbf16, #tpu.memory_space<vmem>>, vector<32x10xbf16>
    %cst_26 = arith.constant dense<0.000000e+00> : vector<8x10xf32>
    %35 = tpu.matmul %33, %34, %cst_26 {dimension_numbers = #tpu.dot_dimension_numbers<[1], [0], [0], [1], [0, 0, 1, 1], [], []>} : vector<8x32xbf16>, vector<32x10xbf16>, vector<8x10xf32> -> vector<8x10xf32>
    %c0_27 = arith.constant 0 : index
    %c0_28 = arith.constant 0 : index
    %36 = vector.load %arg11[%c0_27, %c0_28] : memref<1x10xf32, #tpu.memory_space<vmem>>, vector<1x10xf32>
    %37 = vector.broadcast %36 : vector<1x10xf32> to vector<8x10xf32>
    %38 = arith.addf %35, %37 : vector<8x10xf32>
    %c0_29 = arith.constant 0 : index
    %c0_30 = arith.constant 0 : index
    %39 = vector.load %arg12[%c0_29, %c0_30] : memref<8x10xf32, #tpu.memory_space<vmem>>, vector<8x10xf32>
    tpu.vector_store %arg12[%c0_29, %c0_30], %38 {strides = array<i32>} : memref<8x10xf32, #tpu.memory_space<vmem>>, vector<8x10xf32>,
    return
  }
  func.func @transform_0(%arg0: i32) -> (i32, i32) {
    %c0_i32 = arith.constant 0 : i32
    %c0_i32_0 = arith.constant 0 : i32
    return %arg0, %c0_i32 : i32, i32
  }
  func.func @transform_1(%arg0: i32) -> (i32, i32) {
    %c0_i32 = arith.constant 0 : i32
    %c0_i32_0 = arith.constant 0 : i32
    %c0_i32_1 = arith.constant 0 : i32
    return %c0_i32, %c0_i32_0 : i32, i32
  }
  func.func @transform_2(%arg0: i32) -> (i32, i32) {
    %c0_i32 = arith.constant 0 : i32
    %c0_i32_0 = arith.constant 0 : i32
    %c0_i32_1 = arith.constant 0 : i32
    return %c0_i32, %c0_i32_0 : i32, i32
  }
  func.func @transform_3(%arg0: i32) -> (i32, i32) {
    %c0_i32 = arith.constant 0 : i32
    %c0_i32_0 = arith.constant 0 : i32
    %c0_i32_1 = arith.constant 0 : i32
    return %c0_i32, %c0_i32_0 : i32, i32
  }
  func.func @transform_4(%arg0: i32) -> (i32, i32) {
    %c0_i32 = arith.constant 0 : i32
    %c0_i32_0 = arith.constant 0 : i32
    %c0_i32_1 = arith.constant 0 : i32
    return %c0_i32, %c0_i32_0 : i32, i32
  }
  func.func @transform_5(%arg0: i32) -> (i32, i32) {
    %c0_i32 = arith.constant 0 : i32
    %c0_i32_0 = arith.constant 0 : i32
    %c0_i32_1 = arith.constant 0 : i32
    return %c0_i32, %c0_i32_0 : i32, i32
  }
  func.func @transform_6(%arg0: i32) -> (i32, i32) {
    %c0_i32 = arith.constant 0 : i32
    %c0_i32_0 = arith.constant 0 : i32
    %c0_i32_1 = arith.constant 0 : i32
    return %c0_i32, %c0_i32_0 : i32, i32
  }
  func.func @transform_7(%arg0: i32) -> (i32, i32) {
    %c0_i32 = arith.constant 0 : i32
    %c0_i32_0 = arith.constant 0 : i32
    %c0_i32_1 = arith.constant 0 : i32
    return %c0_i32, %c0_i32_0 : i32, i32
  }
  func.func @transform_8(%arg0: i32) -> (i32, i32) {
    %c0_i32 = arith.constant 0 : i32
    %c0_i32_0 = arith.constant 0 : i32
    %c0_i32_1 = arith.constant 0 : i32
    return %c0_i32, %c0_i32_0 : i32, i32
  }
  func.func @transform_9(%arg0: i32) -> (i32, i32) {
    %c0_i32 = arith.constant 0 : i32
    %c0_i32_0 = arith.constant 0 : i32
    %c0_i32_1 = arith.constant 0 : i32
    return %c0_i32, %c0_i32_0 : i32, i32
  }
  func.func @transform_10(%arg0: i32) -> (i32, i32) {
    %c0_i32 = arith.constant 0 : i32
    %c0_i32_0 = arith.constant 0 : i32
    %c0_i32_1 = arith.constant 0 : i32
    return %c0_i32, %c0_i32_0 : i32, i32
  }
  func.func @transform_11(%arg0: i32) -> (i32, i32) {
    %c0_i32 = arith.constant 0 : i32
    %c0_i32_0 = arith.constant 0 : i32
    return %arg0, %c0_i32 : i32, i32
  }
}

</mosaic_0001>

<bundles_post_ra>
// kernel: shallow_network.1
= control target key start
LH: loop header
LB: loop body
LE: loop exit
PB: predicated region body
PF: predicated region fallthrough
CT: control target
= control target key end

     0   :  { %s2231_s0 = inlined_call_operand.vmem [shape: f32[8,784], index: 0, kind: input, shape index: {}]   ;;  %s2232_s1 = inlined_call_operand.vmem [shape: bf16[784,256], index: 1, kind: input, shape index: {}]   ;;  %s2233_s2 = inlined_call_operand.vmem [shape: f32[1,256], index: 2, kind: input, shape index: {}]   ;;  %s2234_s3 = inlined_call_operand.vmem [shape: bf16[256,128], index: 3, kind: input, shape index: {}]   ;;  %s2235_s4 = inlined_call_operand.vmem [shape: f32[1,128], index: 4, kind: input, shape index: {}]   ;;  %s2236_s5 = inlined_call_operand.vmem [shape: bf16[128,64], index: 5, kind: input, shape index: {}]   ;;  %s2237_s6 = inlined_call_operand.vmem [shape: f32[1,64], index: 6, kind: input, shape index: {}]   ;;  %s2238_s7 = inlined_call_operand.vmem [shape: bf16[64,32], index: 7, kind: input, shape index: {}]   ;;  %s2239_s8 = inlined_call_operand.vmem [shape: f32[1,32], index: 8, kind: input, shape index: {}]   ;;  %s2240_s9 = inlined_call_operand.vmem [shape: bf16[32,10], index: 9, kind: input, shape index: {}]   ;;  %s2241_s10 = inlined_call_operand.vmem [shape: f32[1,10], index: 10, kind: input, shape index: {}]   ;;  %s2242_s11 = inlined_call_operand.hbm [shape: f32[8,10], index: 11, kind: output, shape index: {}]  }
   0x1   :  { %v1514_v0 = vld [vmem:[%s2232_s1 + $0x104] ss:$8 sps:$4 sm:$0xff]   ;;  %v1516_v1 = vld [vmem:[%s2232_s1 + $0x100] ss:$8 sps:$4 sm:$0xff]   ;;  %v1517_v2 = vld [vmem:[%s2232_s1 + $0x114] ss:$8 sps:$4 sm:$0xff]  }
   0x2   :  { %699 = vmatprep.subr.bf16.mxu0 %v1514_v0  ;;  %v1519_v3 = vld [vmem:[%s2232_s1 + $0x110] ss:$8 sps:$4 sm:$0xff]   ;;  %v1520_v4 = vld [vmem:[%s2232_s1 + $0x124] ss:$8 sps:$4 sm:$0xff]   ;;  %v1522_v5 = vld [vmem:[%s2232_s1 + $0x120] ss:$8 sps:$4 sm:$0xff]  }
   0x3   :  { %700 = vmatpush1.bf16.msra.mxu0 %v1516_v1  ;;  %v1523_v6 = vld [vmem:[%s2232_s1 + $0x134] ss:$8 sps:$4 sm:$0xff]   ;;  %v1525_v7 = vld [vmem:[%s2232_s1 + $0x130] ss:$8 sps:$4 sm:$0xff]   ;;  %v1526_v8 = vld [vmem:[%s2232_s1 + $0x144] ss:$8 sps:$4 sm:$0xff]  }
   0x4   :  { %701 = vmatprep.subr.bf16.mxu0 %v1517_v2  ;;  %v1528_v9 = vld [vmem:[%s2232_s1 + $0x140] ss:$8 sps:$4 sm:$0xff]   ;;  %v1529_v10 = vld [vmem:[%s2232_s1 + $0x154] ss:$8 sps:$4 sm:$0xff]   ;;  %v1531_v11 = vld [vmem:[%s2232_s1 + $0x150] ss:$8 sps:$4 sm:$0xff]  }
   0x5   :  { %v1532_v12 = vld [vmem:[%s2232_s1 + $0x164] ss:$8 sps:$4 sm:$0xff]   ;;  %v43_v13 = vld [vmem:[%s2231_s0 + $0x18] sm:$0xff]  ;;  %v1534_v15 = vld [vmem:[%s2232_s1 + $0x160] ss:$8 sps:$4 sm:$0xff]  }
   0x6   :  { %v50_v14 = vpack.c.bf16 %v43_v13, %v43_v13  ;;  %v1535_v16 = vld [vmem:[%s2232_s1 + $0x174] ss:$8 sps:$4 sm:$0xff]   ;;  %v1568_v17 = vld [vmem:[%s2232_s1 + $0x4] ss:$8 sps:$4 sm:$0xff]   ;;  %v1537_v18 = vld [vmem:[%s2232_s1 + $0x170] ss:$8 sps:$4 sm:$0xff]  }
   0x7   :  { %702 = vmatpush1.bf16.msra.mxu0 %v1519_v3  ;;  %v1538_v19 = vld [vmem:[%s2232_s1 + $0x184] ss:$8 sps:$4 sm:$0xff]   ;;  %658 = vmatprep.subr.bf16.mxu1 %v1568_v17  ;;  %v1573_v20 = vld [vmem:[%s2232_s1] ss:$8 sps:$4 sm:$0xff]   ;;  %v1574_v21 = vld [vmem:[%s2232_s1 + $0x14] ss:$8 sps:$4 sm:$0xff]  }
   0x8   :  { %703 = vmatprep.subr.bf16.mxu0 %v1520_v4  ;;  %731 = vmatprep.mubr.bf16.mxu0 %v50_v14  ;;  %v1579_v22 = vld [vmem:[%s2232_s1 + $0x10] ss:$8 sps:$4 sm:$0xff]   ;;  %v1580_v23 = vld [vmem:[%s2232_s1 + $0x24] ss:$8 sps:$4 sm:$0xff]   ;;  %v1540_v24 = vld [vmem:[%s2232_s1 + $0x180] ss:$8 sps:$4 sm:$0xff]  }
   0x9   :  { %659 = vmatpush1.bf16.msra.mxu1 %v1573_v20  ;;  %v1541_v25 = vld [vmem:[%s2232_s1 + $0x194] ss:$8 sps:$4 sm:$0xff]   ;;  %v1585_v26 = vld [vmem:[%s2232_s1 + $0x20] ss:$8 sps:$4 sm:$0xff]   ;;  %v1543_v28 = vld [vmem:[%s2232_s1 + $0x190] ss:$8 sps:$4 sm:$0xff]  }
   0xa   :  { %660 = vmatprep.subr.bf16.mxu1 %v1574_v21  ;;  %v1586_v27 = vld [vmem:[%s2232_s1 + $0x34] ss:$8 sps:$4 sm:$0xff]   ;;  %v1544_v29 = vld [vmem:[%s2232_s1 + $0x1a4] ss:$8 sps:$4 sm:$0xff]   ;;  %v1591_v30 = vld [vmem:[%s2232_s1 + $0x30] ss:$8 sps:$4 sm:$0xff]  }
   0xb   :  { %704 = vmatpush1.bf16.msra.mxu0 %v1522_v5  ;;  %v1592_v31 = vld [vmem:[%s2232_s1 + $0x44] ss:$8 sps:$4 sm:$0xff]   ;;  %v1546_v32 = vld [vmem:[%s2232_s1 + $0x1a0] ss:$8 sps:$4 sm:$0xff]   ;;  %v1547_v33 = vld [vmem:[%s2232_s1 + $0x1b4] ss:$8 sps:$4 sm:$0xff]  }
   0xc   :  { %705 = vmatprep.subr.bf16.mxu0 %v1523_v6  ;;  %v1597_v34 = vld [vmem:[%s2232_s1 + $0x40] ss:$8 sps:$4 sm:$0xff]   ;;  %v1598_v35 = vld [vmem:[%s2232_s1 + $0x54] ss:$8 sps:$4 sm:$0xff]   ;;  %v1549_v36 = vld [vmem:[%s2232_s1 + $0x1b0] ss:$8 sps:$4 sm:$0xff]  }
   0xd   :  { %661 = vmatpush1.bf16.msra.mxu1 %v1579_v22  ;;  %v1550_v37 = vld [vmem:[%s2232_s1 + $0x1c4] ss:$8 sps:$4 sm:$0xff]   ;;  %v1603_v38 = vld [vmem:[%s2232_s1 + $0x50] ss:$8 sps:$4 sm:$0xff]   ;;  %v1552_v40 = vld [vmem:[%s2232_s1 + $0x1c0] ss:$8 sps:$4 sm:$0xff]  }
   0xe   :  { %662 = vmatprep.subr.bf16.mxu1 %v1580_v23  ;;  %v1604_v39 = vld [vmem:[%s2232_s1 + $0x64] ss:$8 sps:$4 sm:$0xff]   ;;  %v1553_v41 = vld [vmem:[%s2232_s1 + $0x1d4] ss:$8 sps:$4 sm:$0xff]   ;;  %v1609_v42 = vld [vmem:[%s2232_s1 + $0x60] ss:$8 sps:$4 sm:$0xff]  }
   0xf   :  { %706 = vmatpush1.bf16.msra.mxu0 %v1525_v7  ;;  %v1610_v43 = vld [vmem:[%s2232_s1 + $0x74] ss:$8 sps:$4 sm:$0xff]   ;;  %v1555_v44 = vld [vmem:[%s2232_s1 + $0x1d0] ss:$8 sps:$4 sm:$0xff]   ;;  %v1556_v45 = vld [vmem:[%s2232_s1 + $0x1e4] ss:$8 sps:$4 sm:$0xff]  }
  0x10   :  { %707 = vmatprep.subr.bf16.mxu0 %v1526_v8  ;;  %v1615_v46 = vld [vmem:[%s2232_s1 + $0x70] ss:$8 sps:$4 sm:$0xff]   ;;  %v1616_v47 = vld [vmem:[%s2232_s1 + $0x84] ss:$8 sps:$4 sm:$0xff]   ;;  %v1558_v48 = vld [vmem:[%s2232_s1 + $0x1e0] ss:$8 sps:$4 sm:$0xff]  }
  0x11   :  { %663 = vmatpush1.bf16.msra.mxu1 %v1585_v26  ;;  %v1559_v49 = vld [vmem:[%s2232_s1 + $0x1f4] ss:$8 sps:$4 sm:$0xff]   ;;  %v1621_v50 = vld [vmem:[%s2232_s1 + $0x80] ss:$8 sps:$4 sm:$0xff]   ;;  %v1561_v51 = vld [vmem:[%s2232_s1 + $0x1f0] ss:$8 sps:$4 sm:$0xff]  }
  0x12   :  { %664 = vmatprep.subr.bf16.mxu1 %v1586_v27  ;;  %v1622_v52 = vld [vmem:[%s2232_s1 + $0x94] ss:$8 sps:$4 sm:$0xff]   ;;  %v1564_v54 = vld [vmem:[%s2232_s1 + $0x204] ss:$8 sps:$4 sm:$0xff]   ;;  %v1627_v55 = vld [vmem:[%s2232_s1 + $0x90] ss:$8 sps:$4 sm:$0xff]  }
  0x13   :  { %708 = vmatpush1.bf16.msra.mxu0 %v1528_v9  ;;  %v42_v53 = vld [vmem:[%s2231_s0 + $0x10] sm:$0xff]  ;;  %v1628_v56 = vld [vmem:[%s2232_s1 + $0xa4] ss:$8 sps:$4 sm:$0xff]   ;;  %v1562_v59 = vld [vmem:[%s2232_s1 + $0x200] ss:$8 sps:$4 sm:$0xff]  }
  0x14   :  { %709 = vmatprep.subr.bf16.mxu0 %v1529_v10  ;;  %v49_v57 = vpack.c.bf16 %v42_v53, %v42_v53  ;;  %v45_v58 = vld [vmem:[%s2231_s0 + $0x28] sm:$0xff]  ;;  %v1567_v61 = vld [vmem:[%s2232_s1 + $0x214] ss:$8 sps:$4 sm:$0xff]   ;;  %v1565_v1 = vld [vmem:[%s2232_s1 + $0x210] ss:$8 sps:$4 sm:$0xff]  }
  0x15   :  { %665 = vmatpush1.bf16.msra.mxu1 %v1591_v30  ;;  %v52_v60 = vpack.c.bf16 %v45_v58, %v45_v58  ;;  %v1633_v62 = vld [vmem:[%s2232_s1 + $0xa0] ss:$8 sps:$4 sm:$0xff]   ;;  %v1634_v63 = vld [vmem:[%s2232_s1 + $0xb4] ss:$8 sps:$4 sm:$0xff]   ;;  %v1572_v3 = vld [vmem:[%s2232_s1 + $0x224] ss:$8 sps:$4 sm:$0xff]  }
  0x16   :  { %666 = vmatprep.subr.bf16.mxu1 %v1592_v31  ;;  %v41_v0 = vld [vmem:[%s2231_s0 + $0x8] sm:$0xff]  ;;  %v1639_v4 = vld [vmem:[%s2232_s1 + $0xb0] ss:$8 sps:$4 sm:$0xff]   ;;  %v1578_v7 = vld [vmem:[%s2232_s1 + $0x234] ss:$8 sps:$4 sm:$0xff]  }
  0x17   :  { %710 = vmatpush1.bf16.msra.mxu0 %v1531_v11  ;;  %v48_v2 = vpack.c.bf16 %v41_v0, %v41_v0  ;;  %v1640_v5 = vld [vmem:[%s2232_s1 + $0xc4] ss:$8 sps:$4 sm:$0xff]   ;;  %v1570_v6 = vld [vmem:[%s2232_s1 + $0x220] ss:$8 sps:$4 sm:$0xff]   ;;  %v1646_v9 = vld [vmem:[%s2232_s1 + $0xd4] ss:$8 sps:$4 sm:$0xff]  }
  0x18   :  { %711 = vmatprep.subr.bf16.mxu0 %v1532_v12  ;;  %v1645_v8 = vld [vmem:[%s2232_s1 + $0xc0] ss:$8 sps:$4 sm:$0xff]   ;;  %v1576_v10 = vld [vmem:[%s2232_s1 + $0x230] ss:$8 sps:$4 sm:$0xff]   ;;  %v1584_v11 = vld [vmem:[%s2232_s1 + $0x244] ss:$8 sps:$4 sm:$0xff]  }
  0x19   :  { %667 = vmatpush1.bf16.msra.mxu1 %v1597_v34  ;;  %690 = vmatprep.mubr.bf16.mxu1 %v48_v2  ;;  %v1582_v12 = vld [vmem:[%s2232_s1 + $0x240] ss:$8 sps:$4 sm:$0xff]   ;;  %v1651_v13 = vld [vmem:[%s2232_s1 + $0xd0] ss:$8 sps:$4 sm:$0xff]   ;;  %v1652_v14 = vld [vmem:[%s2232_s1 + $0xe4] ss:$8 sps:$4 sm:$0xff]  }
  0x1a   :  { %668 = vmatprep.subr.bf16.mxu1 %v1598_v35  ;;  %v1658_v17 = vld [vmem:[%s2232_s1 + $0xf4] ss:$8 sps:$4 sm:$0xff]   ;;  %v1660_v20 = vld [vmem:[%s2232_s1 + $0xf0] ss:$8 sps:$4 sm:$0xff]   ;;  %v40_v21 = vld [vmem:[%s2231_s0] sm:$0xff] }
  0x1b   :  { %712 = vmatpush1.bf16.msra.mxu0 %v1534_v15  ;;  %v1590_v15 = vld [vmem:[%s2232_s1 + $0x254] ss:$8 sps:$4 sm:$0xff]   ;;  %v1661_v22 = vld [vmem:[%s2234_s3 + $0x40] sm:$0xff]   ;;  %v47_v26 = vpack.c.bf16 %v40_v21, %v40_v21  ;;  %v1663_v27 = vld [vmem:[%s2234_s3 + $0x48] sm:$0xff]  }
  0x1c   :  { %713 = vmatprep.subr.bf16.mxu0 %v1535_v16  ;;  %v1657_v16 = vld [vmem:[%s2232_s1 + $0xe0] ss:$8 sps:$4 sm:$0xff]  }
  0x1d   :  { %669 = vmatpush1.bf16.msra.mxu1 %v1603_v38  ;;  %v1594_v23 = vld [vmem:[%s2232_s1 + $0x260] ss:$8 sps:$4 sm:$0xff]  }
  0x1e   :  { %670 = vmatprep.subr.bf16.mxu1 %v1604_v39 }
  0x1f   :  { %714 = vmatpush1.bf16.msra.mxu0 %v1537_v18  ;;  %v1588_v18 = vld [vmem:[%s2232_s1 + $0x250] ss:$8 sps:$4 sm:$0xff]  }
  0x20   :  { %715 = vmatprep.subr.bf16.mxu0 %v1538_v19  ;;  %v1596_v19 = vld [vmem:[%s2232_s1 + $0x264] ss:$8 sps:$4 sm:$0xff]  }
  0x21   :  { %671 = vmatpush1.bf16.msra.mxu1 %v1609_v42 }
  0x22   :  { %672 = vmatprep.subr.bf16.mxu1 %v1610_v43 }
  0x23   :  { %716 = vmatpush1.bf16.msra.mxu0 %v1540_v24  ;;  %v1602_v24 = vld [vmem:[%s2232_s1 + $0x274] ss:$8 sps:$4 sm:$0xff]  }
  0x24   :  { %717 = vmatprep.subr.bf16.mxu0 %v1541_v25  ;;  %v1662_v25 = vld [vmem:[%s2234_s3] sm:$0xff]  }
  0x25   :  { %673 = vmatpush1.bf16.msra.mxu1 %v1615_v46 }
  0x26   :  { %674 = vmatprep.subr.bf16.mxu1 %v1616_v47 }
  0x27   :  { %718 = vmatpush1.bf16.msra.mxu0 %v1543_v28  ;;  %v1600_v28 = vld [vmem:[%s2232_s1 + $0x270] ss:$8 sps:$4 sm:$0xff]  }
  0x28   :  { %719 = vmatprep.subr.bf16.mxu0 %v1544_v29 }
  0x29   :  { %675 = vmatpush1.bf16.msra.mxu1 %v1621_v50 }
  0x2a   :  { %676 = vmatprep.subr.bf16.mxu1 %v1622_v52 }
  0x2b   :  { %720 = vmatpush1.bf16.msra.mxu0 %v1546_v32 }
  0x2c   :  { %721 = vmatprep.subr.bf16.mxu0 %v1547_v33 }
  0x2d   :  { %677 = vmatpush1.bf16.msra.mxu1 %v1627_v55 }
  0x2e   :  { %678 = vmatprep.subr.bf16.mxu1 %v1628_v56 }
  0x2f   :  { %722 = vmatpush1.bf16.msra.mxu0 %v1549_v36 }
  0x30   :  { %723 = vmatprep.subr.bf16.mxu0 %v1550_v37 }
  0x31   :  { %679 = vmatpush1.bf16.msra.mxu1 %v1633_v62 }
  0x32   :  { %680 = vmatprep.subr.bf16.mxu1 %v1634_v63 }
  0x33   :  { %724 = vmatpush1.bf16.msra.mxu0 %v1552_v40 }
  0x34   :  { %725 = vmatprep.subr.bf16.mxu0 %v1553_v41 }
  0x35   :  { %681 = vmatpush1.bf16.msra.mxu1 %v1639_v4 }
  0x36   :  { %682 = vmatprep.subr.bf16.mxu1 %v1640_v5 }
  0x37   :  { %726 = vmatpush1.bf16.msra.mxu0 %v1555_v44 }
  0x38   :  { %727 = vmatprep.subr.bf16.mxu0 %v1556_v45 }
  0x39   :  { %683 = vmatpush1.bf16.msra.mxu1 %v1645_v8 }
  0x3a   :  { %684 = vmatprep.subr.bf16.mxu1 %v1646_v9 }
  0x3b   :  { %728 = vmatpush1.bf16.msra.mxu0 %v1558_v48 }
  0x3c   :  { %729 = vmatprep.subr.bf16.mxu0 %v1559_v49 }
  0x3d   :  { %685 = vmatpush1.bf16.msra.mxu1 %v1651_v13 }
  0x3e   :  { %686 = vmatprep.subr.bf16.mxu1 %v1652_v14 }
  0x3f   :  { %730 = vmatpush1.bf16.msra.mxu0 %v1561_v51 }
  0x40   :  { %740 = vmatprep.subr.bf16.mxu0 %v1564_v54 }
  0x41   :  { %687 = vmatpush1.bf16.msra.mxu1 %v1657_v16 }
  0x42   :  { %732 = vmatmul.mubr.bf16.vlgmr.msra.gmra.mrb[0].mxu0 %v49_v57  ;;  %688 = vmatprep.subr.bf16.mxu1 %v1658_v17 }
  0x43   :  { %741 = vmatpush1.bf16.msra.mxu0 %v1562_v59  ;;  %772 = vmatprep.mubr.bf16.mxu0 %v52_v60 }
  0x44   :  { %742 = vmatprep.subr.bf16.mxu0 %v1567_v61 }
  0x45   :  { %689 = vmatpush1.bf16.msra.mxu1 %v1660_v20 }
  0x46   :  { %1419 = vmatprep.subr.bf16.mxu1 %v1661_v22 }
  0x47   :  { %743 = vmatpush1.bf16.msra.mxu0 %v1565_v1 }
  0x48   :  { %744 = vmatprep.subr.bf16.mxu0 %v1572_v3 }
  0x4b   :  { %745 = vmatpush1.bf16.msra.mxu0 %v1570_v6 }
  0x4c   :  { %746 = vmatprep.subr.bf16.mxu0 %v1578_v7 }
  0x4f   :  { %747 = vmatpush1.bf16.msra.mxu0 %v1576_v10 }
  0x50   :  { %748 = vmatprep.subr.bf16.mxu0 %v1584_v11 }
  0x53   :  { %749 = vmatpush1.bf16.msra.mxu0 %v1582_v12 }
  0x54   :  { %750 = vmatprep.subr.bf16.mxu0 %v1590_v15 }
  0x57   :  { %751 = vmatpush1.bf16.msra.mxu0 %v1588_v18 }
  0x58   :  { %752 = vmatprep.subr.bf16.mxu0 %v1596_v19 }
  0x5b   :  { %753 = vmatpush1.bf16.msra.mxu0 %v1594_v23 }
  0x5c   :  { %16 = vsyncpa [#allocation3], 0  ;;  %754 = vmatprep.subr.bf16.mxu0 %v1602_v24  ;;  %v1608_v29 = vld [vmem:[%s2232_s1 + $0x284] ss:$8 sps:$4 sm:$0xff]   ;;  %691 = vmatmul.mubr.bf16.vlgmr.msra.gmra.mrb[0].mxu1 %v47_v26  ;;  %v1665_v31 = vld [vmem:[%s2234_s3 + $0x50] sm:$0xff]   ;;  %v1715_v56 = vmov 0   ;;  %v154_v6 = vlaneseq }
  0x5d   :  { %1420 = vmatpush3.bf16.msra.mxu1 %v1662_v25  ;;  %v1664_v30 = vld [vmem:[%s2234_s3 + $0x8] sm:$0xff]   ;;  %v1614_v33 = vld [vmem:[%s2232_s1 + $0x294] ss:$8 sps:$4 sm:$0xff]   ;;  %v1612_v36 = vld [vmem:[%s2232_s1 + $0x290] ss:$8 sps:$4 sm:$0xff]   ;;  %vm654_vm0 = vcmask 130048  }
  0x5e   :  { %1421 = vmatprep.subr.bf16.mxu1 %v1663_v27  ;;  %v1606_v32 = vld [vmem:[%s2232_s1 + $0x280] ss:$8 sps:$4 sm:$0xff]   ;;  %v1666_v34 = vld [vmem:[%s2234_s3 + $0x10] sm:$0xff]   ;;  %v1667_v35 = vld [vmem:[%s2234_s3 + $0x58] sm:$0xff]   ;;  %v1716_v1 = vmov 0.0   ;;  %v155_v7 = vshrl.u32 %v154_v6, 7 }
  0x5f   :  { %755 = vmatpush1.bf16.msra.mxu0 %v1600_v28  ;;  %v1620_v37 = vld [vmem:[%s2232_s1 + $0x2a4] ss:$8 sps:$4 sm:$0xff]   ;;  %v1668_v38 = vld [vmem:[%s2234_s3 + $0x18] sm:$0xff]   ;;  %v1618_v40 = vld [vmem:[%s2232_s1 + $0x2a0] ss:$8 sps:$4 sm:$0xff]   ;;  %vm1717_vm1 = vmmov 0  }
  0x60   :  { %756 = vmatprep.subr.bf16.mxu0 %v1608_v29  ;;  %v1669_v39 = vld [vmem:[%s2234_s3 + $0x60] sm:$0xff]   ;;  %v1626_v41 = vld [vmem:[%s2232_s1 + $0x2b4] ss:$8 sps:$4 sm:$0xff]   ;;  %v1624_v43 = vld [vmem:[%s2232_s1 + $0x2b0] ss:$8 sps:$4 sm:$0xff]   ;;  %v156_v8 = vsub.s32 0, %v155_v7 }
  0x61   :  { %1422 = vmatpush3.bf16.msra.mxu1 %v1664_v30  ;;  %v1670_v42 = vld [vmem:[%s2234_s3 + $0x20] sm:$0xff]   ;;  %v1638_v46 = vld [vmem:[%s2232_s1 + $0x2d4] ss:$8 sps:$4 sm:$0xff]   ;;  %v1636_v47 = vld [vmem:[%s2232_s1 + $0x2d0] ss:$8 sps:$4 sm:$0xff]   ;;  %v160_v10 = vsub.s32 1, %v155_v7 }
  0x62   :  { %1423 = vmatprep.subr.bf16.mxu1 %v1665_v31  ;;  %v1632_v44 = vld [vmem:[%s2232_s1 + $0x2c4] ss:$8 sps:$4 sm:$0xff]   ;;  %v1630_v45 = vld [vmem:[%s2232_s1 + $0x2c0] ss:$8 sps:$4 sm:$0xff]   ;;  %v1650_v50 = vld [vmem:[%s2232_s1 + $0x2f4] ss:$8 sps:$4 sm:$0xff]  }
  0x63   :  { %757 = vmatpush1.bf16.msra.mxu0 %v1606_v32  ;;  %v1644_v48 = vld [vmem:[%s2232_s1 + $0x2e4] ss:$8 sps:$4 sm:$0xff]   ;;  %v1642_v49 = vld [vmem:[%s2232_s1 + $0x2e0] ss:$8 sps:$4 sm:$0xff]   ;;  %v1648_v51 = vld [vmem:[%s2232_s1 + $0x2f0] ss:$8 sps:$4 sm:$0xff]  }
  0x64   :  { %758 = vmatprep.subr.bf16.mxu0 %v1614_v33  ;;  %v44_v52 = vld [vmem:[%s2231_s0 + $0x20] sm:$0xff]  ;;  %v46_v57 = vld [vmem:[%s2231_s0 + $0x30] sm:$0xff]  ;;  %v1671_v59 = vld [vmem:[%s2234_s3 + $0x68] sm:$0xff]   ;;  %vm1155_vm2 = vcmask 523264   ;;  %vm1224_vm3 = vcmask 261120   ;;  %s1718_s19 = smov [#allocation2]  }
  0x65   :  { %1424 = vmatpush3.bf16.msra.mxu1 %v1666_v34  ;;  %v1656_v53 = vld [vmem:[%s2232_s1 + $0x304] ss:$8 sps:$4 sm:$0xff]   ;;  %v51_v54 = vpack.c.bf16 %v44_v52, %v44_v52  ;;  %v1654_v55 = vld [vmem:[%s2232_s1 + $0x300] ss:$8 sps:$4 sm:$0xff]   ;;  %v53_v58 = vpack.c.bf16 %v46_v57, %v46_v57  ;;  %v1673_v61 = vld [vmem:[%s2234_s3 + $0x70] sm:$0xff]   ;;  %vm1268_vm4 = vcmask 80896  }
  0x66   :  { %1425 = vmatprep.subr.bf16.mxu1 %v1667_v35  ;;  %v1672_v60 = vld [vmem:[%s2234_s3 + $0x28] sm:$0xff]   ;;  %v1674_v62 = vld [vmem:[%s2234_s3 + $0x30] sm:$0xff]   ;;  %v1675_v63 = vld [vmem:[%s2234_s3 + $0x78] sm:$0xff]  }
  0x67   :  { %759 = vmatpush1.bf16.msra.mxu0 %v1612_v36  ;;  %v1676_v0 = vld [vmem:[%s2234_s3 + $0x38] sm:$0xff]   ;;  %v152_v9 = vld [vmem:[%s2233_s2] sm:$0x3]  ;;  %v1678_v26 = vld [vmem:[%s2236_s5 + $0x8] sm:$0xff]  }
  0x68   :  { %760 = vmatprep.subr.bf16.mxu0 %v1620_v37  ;;  %v157_v11 = vrot.slane %v152_v9, %v156_v8  ;;  %v161_v12 = vrot.slane %v152_v9, %v160_v10  ;;  %v1677_v24 = vld [vmem:[%s2236_s5] sm:$0xff]   ;;  %v1679_v27 = vld [vmem:[%s2236_s5 + $0x10] sm:$0xff]   ;;  %v1680_v28 = vld [vmem:[%s2236_s5 + $0x18] sm:$0xff]  }
  0x69   :  { %1426 = vmatpush3.bf16.msra.mxu1 %v1668_v38  ;;  %v1681_v29 = vld [vmem:[%s2236_s5 + $0x20] sm:$0xff]   ;;  %v1682_v30 = vld [vmem:[%s2236_s5 + $0x28] sm:$0xff]   ;;  %v1683_v31 = vld [vmem:[%s2236_s5 + $0x30] sm:$0xff]  }
  0x6a   :  { %1427 = vmatprep.subr.bf16.mxu1 %v1669_v39  ;;  %v1684_v32 = vld [vmem:[%s2236_s5 + $0x38] sm:$0xff]   ;;  %v1383_v34 = vld [vmem:[%s2235_s4] ss:$0 sm:$0xff] }
  0x6b   :  { %761 = vmatpush1.bf16.msra.mxu0 %v1618_v40 }
  0x6c   :  { %762 = vmatprep.subr.bf16.mxu0 %v1626_v41  ;;  %v1685_v41 = vld [vmem:[%s2238_s7] sm:$0xff]  }
  0x6d   :  { %1428 = vmatpush3.bf16.msra.mxu1 %v1670_v42 }
  0x6e   :  { %1429 = vmatprep.subr.bf16.mxu1 %v1671_v59 }
  0x6f   :  { %763 = vmatpush1.bf16.msra.mxu0 %v1624_v43  ;;  %v1686_v43 = vld [vmem:[%s2238_s7 + $0x8] sm:$0xff]  }
  0x70   :  { %764 = vmatprep.subr.bf16.mxu0 %v1632_v44  ;;  %v1687_v44 = vld [vmem:[%s2238_s7 + $0x10] sm:$0xff]  }
  0x71   :  { %1430 = vmatpush3.bf16.msra.mxu1 %v1672_v60 }
  0x72   :  { %1431 = vmatprep.subr.bf16.mxu1 %v1673_v61 }
  0x73   :  { %765 = vmatpush1.bf16.msra.mxu0 %v1630_v45  ;;  %v1688_v45 = vld [vmem:[%s2238_s7 + $0x18] sm:$0xff]  }
  0x74   :  { %766 = vmatprep.subr.bf16.mxu0 %v1638_v46  ;;  %v1400_v46 = vld [vmem:[%s2237_s6] ss:$0 sm:$0xff] }
  0x75   :  { %1432 = vmatpush3.bf16.msra.mxu1 %v1674_v62 }
  0x76   :  { %1433 = vmatprep.subr.bf16.mxu1 %v1675_v63 }
  0x77   :  { %767 = vmatpush1.bf16.msra.mxu0 %v1636_v47 }
  0x78   :  { %768 = vmatprep.subr.bf16.mxu0 %v1644_v48 }
  0x79   :  { %1434 = vmatpush3.bf16.msra.mxu1 %v1676_v0  ;;  %v1415_v0 = vld [vmem:[%s2241_s10] ss:$0 sm:$0xff] }
  0x7a   :  { %1458 = vmatprep.subr.bf16.mxu1 %v1716_v1 }
  0x7b   :  { %769 = vmatpush1.bf16.msra.mxu0 %v1642_v49 }
  0x7c   :  { %770 = vmatprep.subr.bf16.mxu0 %v1650_v50 }
  0x7f   :  { %771 = vmatpush1.bf16.msra.mxu0 %v1648_v51 }
  0x80   :  { %781 = vmatprep.subr.bf16.mxu0 %v1656_v53 }
  0x82   :  { %773 = vmatmul.mubr.bf16.vlgmr.msra.gmra.mrb[0].mxu0 %v51_v54  ;;  %v1689_v54 = vld [vmem:[%s2240_s9] sm:$0xff]  }
  0x83   :  { %782 = vmatpush1.bf16.msra.mxu0 %v1654_v55  ;;  %813 = vmatprep.mubr.bf16.mxu0 %v1715_v56  ;;  %v1690_v55 = vld [vmem:[%s2240_s9 + $0x8] sm:$0xff]   ;;  %v1409_v56 = vld [vmem:[%s2239_s8] ss:$0 sm:$0xff]  ;;  %s1276_s9 = sshll.u32 %s1718_s19, 4  ;;  %s1277_s9 = int_to_ptr.vmem [resolvable:$true] %s1276_s9 }
  0x84   :  { %1490 = vmatprep.subr.bf16.mxu0 %v1716_v1  ;;  %s1691_s8 = scalar_lea.vmem %s1277_s9, 128  ;;  %p1696_p1 = scmp.lt.s32.totalorder %s1277_s9, %s1277_s9 }
  0x85   :  { %p1692_p0 = scmp.ne.s32.totalorder %s1277_s9, %s1691_s8  ;;  %p1697_p2 = scmp.lt.s32.totalorder %s1691_s8, %s1691_s8 }
  0x87   :  { %p1698_p3 = por %p1697_p2, %p1696_p1 }
  0x89   :  { %p1699_p4 = pnand %p1698_p3, %p1692_p0 }
  0x8e   :  { %1382 = vmatmul.mubr.msk.bf16.vlgmr.msra.gmra.mrb[0].mxu0 %vm654_vm0, %v53_v58 }
  0x8f   :  { %1494 = vmatprep.mubr.msk.bf16.mxu0 %vm1717_vm1, %v1716_v1  ;;  %1491 = vmatpush3.bf16.msra.mxu0 %v1689_v54 }
  0x90   :  { %1492 = vmatprep.subr.bf16.mxu0 %v1716_v1 }
  0x93   :  { %1493 = vmatpush3.bf16.msra.mxu0 %v1690_v55 }
 0x12f   :  { %v692_v2 = vpop.f32.mrb[0].mxu1 }
 0x130   :  { %v694_v3 = vpop.f32.mrb[1].mxu1  ;;  %v693_v13 = vadd.f32 %v692_v2, %v157_v11 }
 0x131   :  { %v696_v4 = vpop.f32.mrb[2].mxu1  ;;  %v695_v14 = vadd.f32 %v694_v3, %v161_v12 }
 0x132   :  { %v697_v5 = vpop.f32.mrb[3].mxu1 }
 0x161   :  { %v815_v15 = vpop.f32.mrb[0].mxu0 }
 0x162   :  { %v1499_v16 = vadd.f32 %v815_v15, %v693_v13  ;;  %v817_v17 = vpop.f32.mrb[1].mxu0 }
 0x163   :  { %v1501_v18 = vadd.f32 %v817_v17, %v695_v14  ;;  %v819_v19 = vpop.f32.mrb[2].mxu0 }
 0x164   :  { %v822_v20 = vmax.f32 %v1499_v16, 0.0  ;;  %v820_v21 = vpop.f32.mrb[3].mxu0 }
 0x165   :  { %v823_v22 = vmax.f32 %v1501_v18, 0.0 }
 0x166   :  { %v824_v25 = vpack.c.bf16 %v822_v20, %v822_v20 }
 0x167   :  { %v825_v23 = vpack.c.bf16 %v823_v22, %v823_v22 }
 0x169   :  { %993 = vmatprep.mubr.bf16.mxu1 %v825_v23 }
 0x16a   :  { %994 = vmatmul.mubr.bf16.vlgmr.msra.gmra.mrb[4].mxu1 %v824_v25 }
 0x16b   :  { %1459 = vmatpush3.bf16.msra.mxu1 %v1677_v24  ;;  %1474 = vmatprep.mubr.msk.bf16.mxu1 %vm1717_vm1, %v1716_v1 }
 0x16c   :  { %1460 = vmatprep.subr.bf16.mxu1 %v1716_v1 }
 0x16f   :  { %1461 = vmatpush3.bf16.msra.mxu1 %v1678_v26 }
 0x170   :  { %1462 = vmatprep.subr.bf16.mxu1 %v1716_v1 }
 0x173   :  { %1463 = vmatpush3.bf16.msra.mxu1 %v1679_v27 }
 0x174   :  { %1464 = vmatprep.subr.bf16.mxu1 %v1716_v1 }
 0x177   :  { %1465 = vmatpush3.bf16.msra.mxu1 %v1680_v28 }
 0x178   :  { %1466 = vmatprep.subr.bf16.mxu1 %v1716_v1 }
 0x17b   :  { %1467 = vmatpush3.bf16.msra.mxu1 %v1681_v29 }
 0x17c   :  { %1468 = vmatprep.subr.bf16.mxu1 %v1716_v1 }
 0x17f   :  { %1469 = vmatpush3.bf16.msra.mxu1 %v1682_v30 }
 0x180   :  { %1470 = vmatprep.subr.bf16.mxu1 %v1716_v1 }
 0x183   :  { %1471 = vmatpush3.bf16.msra.mxu1 %v1683_v31 }
 0x184   :  { %1472 = vmatprep.subr.bf16.mxu1 %v1716_v1 }
 0x187   :  { %1473 = vmatpush3.bf16.msra.mxu1 %v1684_v32 }
 0x188   :  { %1478 = vmatprep.subr.bf16.mxu1 %v1716_v1 }
 0x23d   :  { %v1435_v33 = vpop.f32.mrb[4].mxu1 }
 0x23e   :  { %v1436_v35 = vpop.f32.mrb[5].mxu1 }
 0x23f   :  { %v1437_v36 = vadd.f32 %v1436_v35, %v1435_v33  ;;  %v1438_v37 = vpop.f32.mrb[6].mxu1 }
 0x240   :  { %v1439_v38 = vpop.f32.mrb[7].mxu1 }
 0x241   :  { %v996_v39 = vadd.f32 %v1437_v36, %v1383_v34 }
 0x243   :  { %v1001_v40 = vmax.f32 %v996_v39, 0.0 }
 0x245   :  { %v1002_v42 = vpack.c.bf16 %v1001_v40, %v1001_v40 }
 0x247   :  { %1475 = vmatmul.mubr.bf16.vlgmr.msra.gmra.mrb[8].mxu1 %v1002_v42 }
 0x248   :  { %1479 = vmatpush3.bf16.msra.mxu1 %v1685_v41  ;;  %1486 = vmatprep.mubr.msk.bf16.mxu1 %vm1717_vm1, %v1716_v1 }
 0x249   :  { %1480 = vmatprep.subr.bf16.mxu1 %v1716_v1 }
 0x24c   :  { %1481 = vmatpush3.bf16.msra.mxu1 %v1686_v43 }
 0x24d   :  { %1482 = vmatprep.subr.bf16.mxu1 %v1716_v1 }
 0x250   :  { %1483 = vmatpush3.bf16.msra.mxu1 %v1687_v44 }
 0x251   :  { %1484 = vmatprep.subr.bf16.mxu1 %v1716_v1 }
 0x254   :  { %1485 = vmatpush3.bf16.msra.mxu1 %v1688_v45 }
 0x31a   :  { %v1108_v47 = vpop.f32.mrb[8].mxu1 }
 0x31b   :  { %v1109_v48 = vadd.f32 %v1400_v46, %v1108_v47  ;;  %v1476_v49 = vpop.f32.mrb[9].mxu1 }
 0x31c   :  { %v1111_v50 = vpop.f32.mrb[10].mxu1 }
 0x31d   :  { %v1114_v51 = vmax.f32 %v1109_v48, 0.0  ;;  %v1477_v52 = vpop.f32.mrb[11].mxu1 }
 0x31f   :  { %v1115_v53 = vpack.c.bf16 %v1114_v51, %v1114_v51 }
 0x321   :  { %1487 = vmatmul.mubr.msk.bf16.vlgmr.msra.gmra.mrb[12].mxu1 %vm1155_vm2, %v1115_v53 }
 0x3f4   :  { %v1193_v57 = vpop.f32.mrb[12].mxu1 }
 0x3f5   :  { %v1194_v58 = vadd.f32 %v1409_v56, %v1193_v57  ;;  %v1488_v59 = vpop.f32.mrb[13].mxu1 }
 0x3f6   :  { %v1196_v60 = vpop.f32.mrb[14].mxu1 }
 0x3f7   :  { %v1199_v61 = vmax.f32 %v1194_v58, 0.0  ;;  %v1489_v62 = vpop.f32.mrb[15].mxu1 }
 0x3f9   :  { %v1200_v63 = vpack.c.bf16 %v1199_v61, %v1199_v61 }
 0x3fb   :  { %1495 = vmatmul.mubr.msk.bf16.vlgmr.msra.gmra.mrb[4].mxu0 %vm1224_vm3, %v1200_v63 }
 0x4ce   :  { %v1262_v1 = vpop.f32.mrb[4].mxu0 }
 0x4cf   :  { %v1263_v2 = vadd.f32 %v1415_v0, %v1262_v1  ;;  %v1496_v3 = vpop.f32.mrb[5].mxu0 }
 0x4d0   :  { %v1265_v4 = vpop.f32.mrb[6].mxu0 }
 0x4d1   :  { %v1497_v5 = vpop.f32.mrb[7].mxu0  ;;  %1269 = vst.msk [vmem:[#allocation2] sm:$0xff] %vm1268_vm4, %v1263_v2 }
 0x4d2   :  { %1702 = shalt.err (!%p1699_p4)
}
 0x4d3   :  { %s1703_s10 = scalar_lea.hbm %s2242_s11, 128 }
 0x4d4   :  { %p1704_p5 = scmp.ne.s32.totalorder %s2242_s11, %s1703_s10  ;;  %p1707_p6 = scmp.lt.u32.totalorder %s1703_s10, %s2242_s11 }
 0x4d6   :  { %p1709_p7 = pnand %p1707_p6, %p1704_p5 }
 0x4d8   :  { %1712 = shalt.err (!%p1709_p7)
}
 0x4d9   :  { %1279 = dma.vmem_to_hbm [thread:$0]  %s1277_s9, 128, %s2242_s11, [#allocation3]  }
 0x4da   :  { %1713 = dma.done.wait [#allocation3], 128  }
 0x4db   :  { %1714 = vsyncadd [#allocation3], 4294967168 }
 0x4dc   :  { %1283 = vsyncpa [#allocation3], 1 }

</bundles_post_ra>
